<compile_context>
chip_gen: v5e
topology: v5e:2x2
jax: 0.10.0
libtpu: 0.0.40
codegen_flags: <defaults>
</compile_context>

<pallas_src>
import functools

import jax
import jax.numpy as jnp
from jax.experimental import pallas as pl
from jax.experimental.pallas import tpu as pltpu


def _round_up(v: int, m: int) -> int:
    return ((v + m - 1) // m) * m


def _fused_mlp_kernel(*refs, n_layers: int, use_bf16_mxu: bool, pack: int):
    """refs = (x, w0, b0, w1, b1, ..., w{L-1}, b{L-1}, out).

    (Linear -> ReLU) * (L-1) -> Linear entirely in VMEM/vregs; only the final
    activation is written back (optionally lane-packed: rows folded into lanes).
    """
    x_ref = refs[0]
    o_ref = refs[1 + 2 * n_layers]

    h = x_ref[...]
    for l in range(n_layers):
        w = refs[1 + 2 * l][...]
        b = refs[2 + 2 * l][...]
        if use_bf16_mxu:
            lhs = h.astype(jnp.bfloat16)
            rhs = w.astype(jnp.bfloat16)
        else:
            lhs, rhs = h, w
        # bf16 x bf16 -> f32 accumulate: single-pass MXU, no f32 emulation.
        y = jnp.dot(lhs, rhs, preferred_element_type=jnp.float32)
        y = y + b  # bias + ReLU in f32 on the VPU
        if l < n_layers - 1:
            y = jnp.maximum(y, 0.0)
        h = y

    if pack > 1:
        # Lane-dense store: fold `pack` consecutive batch rows into the lane
        # axis.  Split leading dim (layout-trivial), then merge the trailing
        # dims into exactly D_out*pack (=128) lanes.
        rows, cols = h.shape
        h = h.reshape(rows // pack, pack, cols)
        h = h.reshape(rows // pack, pack * cols)

    o_ref[...] = h.astype(o_ref.dtype)


def relu_net_pallas(
    x,
    params,
    *,
    tile_m: int = 2048,          # sweep 2048-4096; multiple of 8
    no_grid_max_batch: int = 512,  # below this: single invocation, no grid
    use_bf16_mxu: bool = True,
    pack_output: bool = True,
):
    """Fused ReluNet forward. `params` is a list of (w [D_in,D_out], b [1,D_out])."""
    B, D_in = x.shape
    n = len(params)
    D_out = params[-1][0].shape[1]

    flat_params = []
    for w, b in params:
        flat_params += [w, b]

    # Advisory cost hint for XLA's scheduler around this latency-light kernel.
    flops = 2 * B * sum(int(w.shape[0]) * int(w.shape[1]) for w, _ in params)
    param_bytes = sum(w.size * w.dtype.itemsize + b.size * b.dtype.itemsize
                      for w, b in params)
    bytes_accessed = B * (D_in + D_out) * x.dtype.itemsize + param_bytes
    cost = pl.CostEstimate(flops=flops, transcendentals=0,
                           bytes_accessed=bytes_accessed)

    if B <= no_grid_max_batch:
        # Small batch: single invocation, no grid machinery, everything in VMEM.
        kernel = functools.partial(_fused_mlp_kernel, n_layers=n,
                                   use_bf16_mxu=use_bf16_mxu, pack=1)
        in_specs = [pl.BlockSpec(memory_space=pltpu.MemorySpace.VMEM)] * (1 + 2 * n)
        out_specs = pl.BlockSpec(memory_space=pltpu.MemorySpace.VMEM)
        return pl.pallas_call(
            kernel,
            out_shape=jax.ShapeDtypeStruct((B, D_out), x.dtype),
            in_specs=in_specs,
            out_specs=out_specs,
            cost_estimate=cost,
        )(x, *flat_params)

    # ---- Large batch: batch-tiled grid, weights resident, megacore-parallel ----
    tile_m = _round_up(tile_m, 8)
    # Guarantee >= 2 grid steps so ("parallel",) can shard across v7x's 2 TCs.
    tile = min(tile_m, _round_up(pl.cdiv(B, 2), 8))
    tile = max(tile, 8)
    assert tile % 8 == 0, "batch tile must be a multiple of 8 (sublane)"
    grid = (pl.cdiv(B, tile),)

    # Lane-dense output packing factor (fold rows into lanes so D_out*pack == 128).
    pack = 1
    if pack_output and D_out < 128 and 128 % D_out == 0:
        cand = 128 // D_out
        if tile % cand == 0 and B % cand == 0:
            pack = cand

    kernel = functools.partial(_fused_mlp_kernel, n_layers=n,
                               use_bf16_mxu=use_bf16_mxu, pack=pack)

    in_specs = [pl.BlockSpec((tile, D_in), lambda i: (i, 0))]
    for w, b in params:
        d_in_l, d_out_l = w.shape
        # Constant (0,0) index maps: weights/biases stay resident, not re-DMA'd.
        in_specs.append(pl.BlockSpec((d_in_l, d_out_l), lambda i: (0, 0)))
        in_specs.append(pl.BlockSpec((1, d_out_l), lambda i: (0, 0)))

    if pack > 1:
        out_shape = jax.ShapeDtypeStruct((B // pack, D_out * pack), x.dtype)
        out_specs = pl.BlockSpec((tile // pack, D_out * pack), lambda i: (i, 0))
    else:
        out_shape = jax.ShapeDtypeStruct((B, D_out), x.dtype)
        out_specs = pl.BlockSpec((tile, D_out), lambda i: (i, 0))

    out = pl.pallas_call(
        kernel,
        out_shape=out_shape,
        grid=grid,
        in_specs=in_specs,
        out_specs=out_specs,
        compiler_params=pltpu.CompilerParams(
            dimension_semantics=("parallel",),
            # Big tiles never hit v5e's 16 MiB default scoped VMEM; 64 MiB is
            # <= physical on every generation (incl. v7x's 64 MiB per TC).
            vmem_limit_bytes=64 * 1024 * 1024,
        ),
        cost_estimate=cost,
    )(x, *flat_params)

    if pack > 1:
        out = out.reshape(B, D_out)  # free row-major un-pack outside the kernel
    return out


def init_relu_net_params(key, sizes):
    """Deterministic PyTorch-style init: U(-1/sqrt(fan_in), 1/sqrt(fan_in))."""
    params = []
    for d_in, d_out in zip(sizes[:-1], sizes[1:]):
        key, kw, kb = jax.random.split(key, 3)
        bound = 1.0 / jnp.sqrt(jnp.float32(d_in))
        # stored already transposed to [D_in, D_out]
        w = jax.random.uniform(kw, (d_in, d_out), jnp.float32, -bound, bound)
        b = jax.random.uniform(kb, (1, d_out), jnp.float32, -bound, bound)
        params.append((w, b))
    return params


@jax.jit
def relu_net_forward(x, params):
    """ReluNet.forward: (Linear -> ReLU) * (L-1) -> Linear, one fused kernel."""
    return relu_net_pallas(x, params)


def _ref_forward(x, params, match_bf16=True):
    """Plain-JAX reference of the same math (optionally matching the bf16 MXU cast)."""
    h = x
    for i, (w, b) in enumerate(params):
        lhs = h.astype(jnp.bfloat16).astype(jnp.float32) if match_bf16 else h
        rhs = w.astype(jnp.bfloat16).astype(jnp.float32) if match_bf16 else w
        h = lhs @ rhs + b
        if i < len(params) - 1:
            h = jnp.maximum(h, 0.0)
    return h


if __name__ == "__main__":
    # ReluNet(32, 64, 48, 16): two hidden Linear+ReLU layers, final Linear.
    sizes = (32, 64, 48, 16)

    key = jax.random.PRNGKey(0)
    key, kx = jax.random.split(key)
    params = init_relu_net_params(key, sizes)

    # --- small batch: no-grid all-in-VMEM path ---
    batch = 8
    x = jax.random.normal(kx, (batch, sizes[0]), jnp.float32)
    out = relu_net_forward(x, params)
    jax.block_until_ready(out)
    assert out.shape == (batch, sizes[-1])
    assert jnp.allclose(out, _ref_forward(x, params), atol=1e-3, rtol=1e-3)

    # --- larger batch: tiled grid path (>=2 parallel steps, lane-dense output) ---
    big_batch = 4096
    key, kx2 = jax.random.split(key)
    xb = jax.random.normal(kx2, (big_batch, sizes[0]), jnp.float32)
    out_b = relu_net_forward(xb, params)
    jax.block_until_ready(out_b)
    assert out_b.shape == (big_batch, sizes[-1])
    assert jnp.allclose(out_b, _ref_forward(xb, params), atol=1e-3, rtol=1e-3)

    print("KERNEL_OK")
</pallas_src>

<mosaic_0001>
module attributes {stable_mosaic.version = 11 : i64} {
  func.func @_fused_mlp_kernel(%arg0: memref<8x32xf32, #tpu.memory_space<vmem>>, %arg1: memref<32x64xf32, #tpu.memory_space<vmem>>, %arg2: memref<1x64xf32, #tpu.memory_space<vmem>>, %arg3: memref<64x48xf32, #tpu.memory_space<vmem>>, %arg4: memref<1x48xf32, #tpu.memory_space<vmem>>, %arg5: memref<48x16xf32, #tpu.memory_space<vmem>>, %arg6: memref<1x16xf32, #tpu.memory_space<vmem>>, %arg7: memref<8x16xf32, #tpu.memory_space<vmem>>) attributes {dimension_semantics = [], scalar_prefetch = 0 : i64, scratch_operands = 0 : i64, tpu.core_type = #tpu.core_type<tc>} {
    %c0 = arith.constant 0 : index
    %c0_0 = arith.constant 0 : index
    %0 = vector.load %arg0[%c0, %c0_0] : memref<8x32xf32, #tpu.memory_space<vmem>>, vector<8x32xf32>
    %c0_1 = arith.constant 0 : index
    %c0_2 = arith.constant 0 : index
    %1 = vector.load %arg1[%c0_1, %c0_2] : memref<32x64xf32, #tpu.memory_space<vmem>>, vector<32x64xf32>
    %c0_3 = arith.constant 0 : index
    %c0_4 = arith.constant 0 : index
    %2 = vector.load %arg2[%c0_3, %c0_4] : memref<1x64xf32, #tpu.memory_space<vmem>>, vector<1x64xf32>
    %3 = arith.truncf %0 : vector<8x32xf32> to vector<8x32xbf16>
    %4 = arith.truncf %1 : vector<32x64xf32> to vector<32x64xbf16>
    %cst = arith.constant dense<0.000000e+00> : vector<8x64xf32>
    %5 = tpu.matmul %3, %4, %cst {dimension_numbers = #tpu.dot_dimension_numbers<[1], [0], [0], [1], [0, 0, 1, 1], [], []>} : vector<8x32xbf16>, vector<32x64xbf16>, vector<8x64xf32> -> vector<8x64xf32>
    %6 = vector.broadcast %2 : vector<1x64xf32> to vector<8x64xf32>
    %7 = arith.addf %5, %6 : vector<8x64xf32>
    %cst_5 = arith.constant 0.000000e+00 : f32
    %8 = vector.broadcast %cst_5 : f32 to vector<8x64xf32>
    %9 = arith.maximumf %7, %8 : vector<8x64xf32>
    %c0_6 = arith.constant 0 : index
    %c0_7 = arith.constant 0 : index
    %10 = vector.load %arg3[%c0_6, %c0_7] : memref<64x48xf32, #tpu.memory_space<vmem>>, vector<64x48xf32>
    %c0_8 = arith.constant 0 : index
    %c0_9 = arith.constant 0 : index
    %11 = vector.load %arg4[%c0_8, %c0_9] : memref<1x48xf32, #tpu.memory_space<vmem>>, vector<1x48xf32>
    %12 = arith.truncf %9 : vector<8x64xf32> to vector<8x64xbf16>
    %13 = arith.truncf %10 : vector<64x48xf32> to vector<64x48xbf16>
    %cst_10 = arith.constant dense<0.000000e+00> : vector<8x48xf32>
    %14 = tpu.matmul %12, %13, %cst_10 {dimension_numbers = #tpu.dot_dimension_numbers<[1], [0], [0], [1], [0, 0, 1, 1], [], []>} : vector<8x64xbf16>, vector<64x48xbf16>, vector<8x48xf32> -> vector<8x48xf32>
    %15 = vector.broadcast %11 : vector<1x48xf32> to vector<8x48xf32>
    %16 = arith.addf %14, %15 : vector<8x48xf32>
    %cst_11 = arith.constant 0.000000e+00 : f32
    %17 = vector.broadcast %cst_11 : f32 to vector<8x48xf32>
    %18 = arith.maximumf %16, %17 : vector<8x48xf32>
    %c0_12 = arith.constant 0 : index
    %c0_13 = arith.constant 0 : index
    %19 = vector.load %arg5[%c0_12, %c0_13] : memref<48x16xf32, #tpu.memory_space<vmem>>, vector<48x16xf32>
    %c0_14 = arith.constant 0 : index
    %c0_15 = arith.constant 0 : index
    %20 = vector.load %arg6[%c0_14, %c0_15] : memref<1x16xf32, #tpu.memory_space<vmem>>, vector<1x16xf32>
    %21 = arith.truncf %18 : vector<8x48xf32> to vector<8x48xbf16>
    %22 = arith.truncf %19 : vector<48x16xf32> to vector<48x16xbf16>
    %cst_16 = arith.constant dense<0.000000e+00> : vector<8x16xf32>
    %23 = tpu.matmul %21, %22, %cst_16 {dimension_numbers = #tpu.dot_dimension_numbers<[1], [0], [0], [1], [0, 0, 1, 1], [], []>} : vector<8x48xbf16>, vector<48x16xbf16>, vector<8x16xf32> -> vector<8x16xf32>
    %24 = vector.broadcast %20 : vector<1x16xf32> to vector<8x16xf32>
    %25 = arith.addf %23, %24 : vector<8x16xf32>
    %c0_17 = arith.constant 0 : index
    %c0_18 = arith.constant 0 : index
    %26 = vector.load %arg7[%c0_17, %c0_18] : memref<8x16xf32, #tpu.memory_space<vmem>>, vector<8x16xf32>
    tpu.vector_store %arg7[%c0_17, %c0_18], %25 {strides = array<i32>} : memref<8x16xf32, #tpu.memory_space<vmem>>, vector<8x16xf32>,
    return
  }
}

</mosaic_0001>

<bundles_post_ra>
// kernel: relu_net_forward.1
= control target key start
LH: loop header
LB: loop body
LE: loop exit
PB: predicated region body
PF: predicated region fallthrough
CT: control target
= control target key end

     0   :  { %s285_s0 = inlined_call_operand.vmem [shape: f32[8,32], index: 0, kind: input, shape index: {}]   ;;  %s286_s1 = inlined_call_operand.vmem [shape: f32[32,64], index: 1, kind: input, shape index: {}]   ;;  %s287_s2 = inlined_call_operand.vmem [shape: f32[1,64], index: 2, kind: input, shape index: {}]   ;;  %s288_s3 = inlined_call_operand.vmem [shape: f32[64,48], index: 3, kind: input, shape index: {}]   ;;  %s289_s4 = inlined_call_operand.vmem [shape: f32[1,48], index: 4, kind: input, shape index: {}]   ;;  %s290_s5 = inlined_call_operand.vmem [shape: f32[48,16], index: 5, kind: input, shape index: {}]   ;;  %s291_s6 = inlined_call_operand.vmem [shape: f32[1,16], index: 6, kind: input, shape index: {}]   ;;  %s292_s7 = inlined_call_operand.hbm [shape: f32[8,16], index: 7, kind: output, shape index: {}]  }
   0x1   :  { %v31_v0 = vld [vmem:[%s286_s1 + $0x10] sm:$0xff]  ;;  %v32_v1 = vld [vmem:[%s286_s1 + $0x18] sm:$0xff]  ;;  %v29_v2 = vld [vmem:[%s286_s1] sm:$0xff] }
   0x2   :  { %v36_v3 = vpack.c.bf16 %v32_v1, %v31_v0  ;;  %v30_v4 = vld [vmem:[%s286_s1 + $0x8] sm:$0xff]  ;;  %v64_v5 = vld [vmem:[%s288_s3 + $0x30] sm:$0xff]  ;;  %v65_v6 = vld [vmem:[%s288_s3 + $0x38] sm:$0xff] }
   0x3   :  { %v62_v7 = vld [vmem:[%s288_s3 + $0x20] sm:$0xff]  ;;  %v63_v8 = vld [vmem:[%s288_s3 + $0x28] sm:$0xff]  ;;  %v35_v9 = vpack.c.bf16 %v30_v4, %v29_v2  ;;  %v71_v11 = vpack.c.bf16 %v65_v6, %v64_v5 }
   0x4   :  { %50 = vmatpush.bf16.msra.mxu0 %v36_v3  ;;  %v28_v10 = vld [vmem:[%s285_s0] sm:$0xff] }
   0x5   :  { %12 = vsyncpa [#allocation3], 0  ;;  %83 = vmatpush.bf16.msra.mxu1 %v71_v11  ;;  %v70_v12 = vpack.c.bf16 %v63_v8, %v62_v7  ;;  %v34_v13 = vpack.c.bf16 %v28_v10, %v28_v10  ;;  %vm40_vm0 = vcmask 261120   ;;  %v60_v14 = vld [vmem:[%s288_s3 + $0x10] sm:$0xff]  ;;  %v61_v15 = vld [vmem:[%s288_s3 + $0x18] sm:$0xff]  ;;  %vm75_vm1 = vcmask 523264  }
   0x6   :  { %v69_v16 = vpack.c.bf16 %v61_v15, %v60_v14  ;;  %v58_v17 = vld [vmem:[%s288_s3] sm:$0xff]  ;;  %v59_v18 = vld [vmem:[%s288_s3 + $0x8] sm:$0xff]  ;;  %v95_v29 = vld [vmem:[%s290_s5 + $0x10] sm:$0xff]  ;;  %vm107_vm2 = vcmask 392192   ;;  %s175_s1 = smov [#allocation2]   ;;  %s133_s20 = sshll.u32 %s292_s7, 4  ;;  %s134_s20 = int_to_ptr.hbm [resolvable:$true] %s133_s20 }
   0x7   :  { %v68_v19 = vpack.c.bf16 %v59_v18, %v58_v17  ;;  %v97_v20 = vld [vmem:[%s290_s5 + $0x20] sm:$0xff]  ;;  %v98_v21 = vld [vmem:[%s290_s5 + $0x28] sm:$0xff]  ;;  %v96_v30 = vld [vmem:[%s290_s5 + $0x18] sm:$0xff]  ;;  %s131_s18 = sshll.u32 %s175_s1, 4  ;;  %vm124_vm3 = vcmask 130048   ;;  %s132_s18 = int_to_ptr.vmem [resolvable:$true] %s131_s18 }
   0x8   :  { %51 = vmatpush.bf16.msra.mxu0 %v35_v9  ;;  %v103_v22 = vpack.c.bf16 %v98_v21, %v97_v20  ;;  %v146_v23 = vld [vmem:[%s287_s2] ss:$0 sm:$0xff]  ;;  %v102_v31 = vpack.c.bf16 %v96_v30, %v95_v29  ;;  %v94_v33 = vld [vmem:[%s290_s5 + $0x8] sm:$0xff] }
   0x9   :  { %84 = vmatpush.bf16.msra.mxu1 %v70_v12  ;;  %v93_v32 = vld [vmem:[%s290_s5] sm:$0xff] }
   0xa   :  { %116 = vmatpush.bf16.msra.mxu2 %v103_v22  ;;  %v101_v34 = vpack.c.bf16 %v94_v33, %v93_v32  ;;  %v147_v35 = vld [vmem:[%s289_s4] ss:$0 sm:$0xff] }
   0xb   :  { %142 = vmatmul.msk.bf16.vlgmr.msra.gmra.mxu0 %vm40_vm0, %v34_v13  ;;  %v148_v41 = vld [vmem:[%s291_s6] ss:$0 sm:$0xff] }
   0xd   :  { %85 = vmatpush.bf16.msra.mxu1 %v69_v16 }
   0xe   :  { %117 = vmatpush.bf16.msra.mxu2 %v102_v31 }
  0x11   :  { %86 = vmatpush.bf16.msra.mxu1 %v68_v19 }
  0x12   :  { %118 = vmatpush.bf16.msra.mxu2 %v101_v34 }
  0x88   :  { %v53_v24 = vpop.f32.mrf.mxu0 }
  0x89   :  { %v54_v25 = vadd.f32 %v146_v23, %v53_v24 }
  0x8b   :  { %v57_v26 = vmax.f32 %v54_v25, 0.0 }
  0x8d   :  { %v67_v27 = vpack.c.bf16 %v57_v26, %v57_v26 }
  0x8f   :  { %143 = vmatmul.msk.bf16.vlgmr.msra.gmra.mxu1 %vm75_vm1, %v67_v27 }
  0x90   :  { %v55_v28 = vpop.f32.mrf.mxu0 }
 0x10c   :  { %v88_v36 = vpop.f32.mrf.mxu1 }
 0x10d   :  { %v89_v37 = vadd.f32 %v147_v35, %v88_v36 }
 0x10f   :  { %v92_v38 = vmax.f32 %v89_v37, 0.0 }
 0x111   :  { %v100_v39 = vpack.c.bf16 %v92_v38, %v92_v38 }
 0x113   :  { %144 = vmatmul.msk.bf16.vlgmr.msra.gmra.mxu2 %vm107_vm2, %v100_v39 }
 0x114   :  { %v90_v40 = vpop.f32.mrf.mxu1 }
 0x196   :  { %v120_v42 = vpop.f32.mrf.mxu2 }
 0x197   :  { %v121_v43 = vadd.f32 %v148_v41, %v120_v42 }
 0x199   :  { %125 = vst.msk [vmem:[#allocation2] sm:$0xff] %vm124_vm3, %v121_v43 }
 0x19a   :  { %136 = dma.vmem_to_hbm [thread:$0]  %s132_s18, 128, %s134_s20, [#allocation3]  }
 0x19e   :  { %v122_v44 = vpop.f32.mrf.mxu2 }
 0x19f   :  { %173 = dma.done.wait [#allocation3], 128  }
 0x1a0   :  { %174 = vsyncadd [#allocation3], 4294967168 }
 0x1a1   :  { %141 = vsyncpa [#allocation3], 1 }

</bundles_post_ra>
